<compile_context>
chip_gen: v7x
topology: tpu7x:2x2x1
jax: 0.10.0
libtpu: 0.0.40
codegen_flags: <defaults>
</compile_context>

<pallas_src>
import jax
import jax.numpy as jnp
from jax.experimental import pallas as pl
from jax.experimental.pallas import tpu as pltpu

BN_EPS = 1e-5


def _stats_kernel(x_ref, w_ref, sx_ref, sq_ref):
    """Phase 1: per-image partial sums for BN batch statistics.

    x_ref:  (1, Cin, T)   spatial tile of one image (channels-first, f32)
    w_ref:  (Cout, Cin)   1x1 conv weight
    sx_ref: (1, Cin, 1)   resident per-image accumulator of sum(x)  over pixels
    sq_ref: (1, Cout, 1)  resident per-image accumulator of sum(y*y), y = W @ x
    """
    @pl.when(pl.program_id(1) == 0)
    def _init():
        sx_ref[...] = jnp.zeros_like(sx_ref)
        sq_ref[...] = jnp.zeros_like(sq_ref)

    x = x_ref[0]                                                   # (Cin, T)
    y = jnp.dot(w_ref[...], x, preferred_element_type=jnp.float32) # (Cout, T)
    # NOTE: sums accumulate in f32; var = E[y^2]-E[y]^2 can cancel for extreme
    # N*H*W -- a Welford/centered combine would be more robust at that scale.
    sx_ref[0] += jnp.sum(x, axis=1, keepdims=True)
    sq_ref[0] += jnp.sum(y * y, axis=1, keepdims=True)


def _apply_kernel(x_ref, w2_ref, shift_ref, o_ref):
    """Phase 2: y = (scale*W) @ x_tile, add folded shift, ReLU.

    w2_ref:    (Cout, Cin)  BN scale already folded into the weight.
    shift_ref: (Cout, 1)    broadcast over the lane (spatial) axis.
    o_ref:     (1, Cout, T) lane-dense output tile.
    """
    y = jnp.dot(w2_ref[...], x_ref[0], preferred_element_type=jnp.float32)
    o_ref[0] = jnp.maximum(y + shift_ref[...], 0.0).astype(o_ref.dtype)


def _round_up(x, m):
    return (x + m - 1) // m * m


def _pick_spatial_tile(hw, c_in, c_out, max_tile=131072,
                       vmem_budget=16 * 1024 * 1024):
    """Choose a lane-aligned spatial tile and tile count.

    Targets MiB-scale HBM movement per grid step while keeping the
    double-buffered f32 working set (x in + y out) well under per-generation
    VMEM limits (v7x: 64 MiB physical / 32 MiB scoped).  Returns (tile, s_tiles)
    with tile % 128 == 0 and s_tiles * tile >= hw (zero-padded remainder).
    """
    hw128 = _round_up(hw, 128)
    per_lane_bytes = 2 * 4 * (c_in + c_out)            # double-buffered f32
    cap = max(128, (vmem_budget // per_lane_bytes) // 128 * 128)
    cap = min(cap, max_tile)
    if hw128 <= cap:
        return hw128, 1
    s_tiles = -(-hw128 // cap)                         # cdiv
    tile = _round_up(-(-hw128 // s_tiles), 128)        # balanced, minimal pad
    return tile, s_tiles


def lin_forward(x_nchw, weight, bias, gamma, beta):
    """x_nchw: (N, Cin, H, W); weight: (Cout, Cin); bias/gamma/beta: (Cout,)."""
    # Conv bias cancels exactly under training-mode BN mean subtraction.
    # (Only valid for batch-stat forward; eval-mode/running-stat BN would need it.)
    del bias
    n, c_in, h, w_dim = x_nchw.shape
    c_out = weight.shape[0]
    hw = h * w_dim
    tile, s_tiles = _pick_spatial_tile(hw, c_in, c_out)
    hw_pad = tile * s_tiles
    m_total = n * hw  # real pixel count; zero padding adds nothing to the sums

    x3 = x_nchw.reshape(n, c_in, hw).astype(jnp.float32)   # free reshape
    if hw_pad != hw:
        x3 = jnp.pad(x3, ((0, 0), (0, 0), (0, hw_pad - hw)))
    w_mat = weight.astype(jnp.float32)                      # (Cout, Cin)

    # ---- Phase 1: per-image partial statistics (megacore-parallel over n) ----
    sx, sq = pl.pallas_call(
        _stats_kernel,
        out_shape=(
            jax.ShapeDtypeStruct((n, c_in, 1), jnp.float32),
            jax.ShapeDtypeStruct((n, c_out, 1), jnp.float32),
        ),
        grid=(n, s_tiles),
        in_specs=[
            pl.BlockSpec((1, c_in, tile), lambda i, s: (i, 0, s)),
            pl.BlockSpec((c_out, c_in), lambda i, s: (0, 0)),
        ],
        out_specs=(
            pl.BlockSpec((1, c_in, 1), lambda i, s: (i, 0, 0)),
            pl.BlockSpec((1, c_out, 1), lambda i, s: (i, 0, 0)),
        ),
        compiler_params=pltpu.CompilerParams(
            dimension_semantics=("parallel", "arbitrary"),
            vmem_limit_bytes=32 * 1024 * 1024,
        ),
    )(x3, w_mat)

    # Tiny (Cin,)/(Cout,) glue math: fold BN into one weight scale + shift.
    sx_tot = jnp.sum(sx, axis=0)[:, 0]                 # (Cin,)  sum of x
    sum_y = w_mat @ sx_tot                             # (Cout,) sum of y = W x
    sum_y2 = jnp.sum(sq, axis=0)[:, 0]                 # (Cout,) sum of y^2
    mean = sum_y / m_total
    var = jnp.maximum(sum_y2 / m_total - mean * mean, 0.0)
    scale = gamma.astype(jnp.float32) * jax.lax.rsqrt(var + BN_EPS)
    shift = (beta.astype(jnp.float32) - mean * scale).reshape(c_out, 1)
    w2 = w_mat * scale[:, None]                        # BN scale folded into W

    # ---- Phase 2: (scale*W) @ x + shift, ReLU; lane-dense output --------------
    # TODO(synk): emit bf16 output here if the consumer tolerates it (halves the
    # dominant write traffic); kept f32 for exact parity with the reference.
    out3 = pl.pallas_call(
        _apply_kernel,
        out_shape=jax.ShapeDtypeStruct((n, c_out, hw_pad), jnp.float32),
        grid=(n, s_tiles),
        in_specs=[
            pl.BlockSpec((1, c_in, tile), lambda i, s: (i, 0, s)),
            pl.BlockSpec((c_out, c_in), lambda i, s: (0, 0)),
            pl.BlockSpec((c_out, 1), lambda i, s: (0, 0)),
        ],
        out_specs=pl.BlockSpec((1, c_out, tile), lambda i, s: (i, 0, s)),
        compiler_params=pltpu.CompilerParams(
            dimension_semantics=("parallel", "parallel"),
            vmem_limit_bytes=32 * 1024 * 1024,
        ),
    )(x3, w2, shift)

    if hw_pad != hw:
        out3 = out3[:, :, :hw]
    return out3.reshape(n, c_out, h, w_dim)


def lin_reference(x_nchw, weight, bias, gamma, beta):
    """Pure-JAX reference matching PyTorch Lin.forward in training mode."""
    y = jnp.einsum("nchw,oc->nohw", x_nchw, weight) + bias[None, :, None, None]
    mean = jnp.mean(y, axis=(0, 2, 3), keepdims=True)
    var = jnp.mean((y - mean) ** 2, axis=(0, 2, 3), keepdims=True)
    y_hat = (y - mean) / jnp.sqrt(var + BN_EPS)
    out = y_hat * gamma[None, :, None, None] + beta[None, :, None, None]
    return jnp.maximum(out, 0.0)


if __name__ == "__main__":
    key = jax.random.PRNGKey(0)
    k_x, k_w, k_b, k_g, k_bt = jax.random.split(key, 5)

    N, C_IN, C_OUT, H, W = 2, 4, 8, 16, 16

    x = jax.random.normal(k_x, (N, C_IN, H, W), dtype=jnp.float32)

    # nn.Conv2d(numIn, numout, 1) weight squeezed to (Cout, Cin); BN affine params.
    weight = jax.random.normal(k_w, (C_OUT, C_IN), dtype=jnp.float32) * 0.1
    bias = jax.random.normal(k_b, (C_OUT,), dtype=jnp.float32) * 0.1
    gamma = 1.0 + 0.1 * jax.random.normal(k_g, (C_OUT,), dtype=jnp.float32)
    beta = 0.1 * jax.random.normal(k_bt, (C_OUT,), dtype=jnp.float32)

    out = jax.block_until_ready(lin_forward(x, weight, bias, gamma, beta))
    ref = jax.block_until_ready(lin_reference(x, weight, bias, gamma, beta))

    assert out.shape == (N, C_OUT, H, W), out.shape
    assert jnp.allclose(out, ref, atol=1e-4, rtol=1e-4), "mismatch vs reference"

    # TODO(synk): BatchNorm2d running_mean/running_var momentum updates are not
    # produced (mean/var are available from phase 1 if buffer parity is needed).
    print("KERNEL_OK")
</pallas_src>

<mosaic_0001>
module attributes {stable_mosaic.version = 11 : i64} {
  func.func @_stats_kernel(%arg0: i32, %arg1: i32, %arg2: memref<1x4x256xf32, #tpu.memory_space<vmem>>, %arg3: memref<8x4xf32, #tpu.memory_space<vmem>>, %arg4: memref<1x4x1xf32, #tpu.memory_space<vmem>>, %arg5: memref<1x8x1xf32, #tpu.memory_space<vmem>>) attributes {dimension_semantics = [#tpu.dimension_semantics<parallel>, #tpu.dimension_semantics<arbitrary>], iteration_bounds = array<i64: 2, 1>, scalar_prefetch = 0 : i64, scratch_operands = 0 : i64, tpu.core_type = #tpu.core_type<tc>, window_params = [{transform_indices = @transform_0, window_bounds = array<i64: 1, 4, 256>}, {pipeline_mode = #tpu.pipeline_mode<synchronous>, transform_indices = @transform_1, window_bounds = array<i64: 8, 4>}, {transform_indices = @transform_2, window_bounds = array<i64: 1, 4, 1>}, {transform_indices = @transform_3, window_bounds = array<i64: 1, 8, 1>}]} {
    %c0_i32 = arith.constant 0 : i32
    %0 = arith.cmpi eq, %arg1, %c0_i32 : i32
    %1 = arith.extui %0 : i1 to i32
    %c0_i32_0 = arith.constant 0 : i32
    %2 = arith.cmpi ne, %1, %c0_i32_0 : i32
    scf.if %2 {
      %cst_19 = arith.constant 0.000000e+00 : f32
      %24 = vector.broadcast %cst_19 : f32 to vector<1x4x1xf32>
      %c0_20 = arith.constant 0 : index
      %c0_21 = arith.constant 0 : index
      %c0_22 = arith.constant 0 : index
      %25 = vector.load %arg4[%c0_20, %c0_21, %c0_22] : memref<1x4x1xf32, #tpu.memory_space<vmem>>, vector<1x4x1xf32>
      tpu.vector_store %arg4[%c0_20, %c0_21, %c0_22], %24 {strides = array<i32>} : memref<1x4x1xf32, #tpu.memory_space<vmem>>, vector<1x4x1xf32>,
      %cst_23 = arith.constant 0.000000e+00 : f32
      %26 = vector.broadcast %cst_23 : f32 to vector<1x8x1xf32>
      %c0_24 = arith.constant 0 : index
      %c0_25 = arith.constant 0 : index
      %c0_26 = arith.constant 0 : index
      %27 = vector.load %arg5[%c0_24, %c0_25, %c0_26] : memref<1x8x1xf32, #tpu.memory_space<vmem>>, vector<1x8x1xf32>
      tpu.vector_store %arg5[%c0_24, %c0_25, %c0_26], %26 {strides = array<i32>} : memref<1x8x1xf32, #tpu.memory_space<vmem>>, vector<1x8x1xf32>,
    } else {
    }
    %c0 = arith.constant 0 : index
    %c0_1 = arith.constant 0 : index
    %c0_2 = arith.constant 0 : index
    %3 = vector.load %arg2[%c0, %c0_1, %c0_2] : memref<1x4x256xf32, #tpu.memory_space<vmem>>, vector<1x4x256xf32>
    %4 = vector.shape_cast %3 : vector<1x4x256xf32> to vector<4x256xf32>
    %c0_3 = arith.constant 0 : index
    %c0_4 = arith.constant 0 : index
    %5 = vector.load %arg3[%c0_3, %c0_4] : memref<8x4xf32, #tpu.memory_space<vmem>>, vector<8x4xf32>
    %cst = arith.constant dense<0.000000e+00> : vector<8x256xf32>
    %6 = tpu.matmul %5, %4, %cst {dimension_numbers = #tpu.dot_dimension_numbers<[1], [0], [0], [1], [0, 0, 1, 1], [], []>} : vector<8x4xf32>, vector<4x256xf32>, vector<8x256xf32> -> vector<8x256xf32>
    %c0_5 = arith.constant 0 : index
    %c0_6 = arith.constant 0 : index
    %c0_7 = arith.constant 0 : index
    %7 = vector.load %arg4[%c0_5, %c0_6, %c0_7] : memref<1x4x1xf32, #tpu.memory_space<vmem>>, vector<1x4x1xf32>
    %8 = vector.shape_cast %7 : vector<1x4x1xf32> to vector<4x1xf32>
    %cst_8 = arith.constant dense<0.000000e+00> : vector<4xf32>
    %9 = vector.multi_reduction <add>, %4, %cst_8 [1] : vector<4x256xf32> to vector<4xf32>
    %10 = vector.shape_cast %9 : vector<4xf32> to vector<4x1xf32>
    %11 = arith.addf %8, %10 : vector<4x1xf32>
    %c0_9 = arith.constant 0 : index
    %c0_10 = arith.constant 0 : index
    %c0_11 = arith.constant 0 : index
    %12 = vector.load %arg4[%c0_9, %c0_10, %c0_11] : memref<1x4x1xf32, #tpu.memory_space<vmem>>, vector<1x4x1xf32>
    %13 = vector.shape_cast %12 : vector<1x4x1xf32> to vector<4x1xf32>
    %14 = vector.shape_cast %11 : vector<4x1xf32> to vector<1x4x1xf32>
    tpu.vector_store %arg4[%c0_9, %c0_10, %c0_11], %14 {strides = array<i32>} : memref<1x4x1xf32, #tpu.memory_space<vmem>>, vector<1x4x1xf32>,
    %c0_12 = arith.constant 0 : index
    %c0_13 = arith.constant 0 : index
    %c0_14 = arith.constant 0 : index
    %15 = vector.load %arg5[%c0_12, %c0_13, %c0_14] : memref<1x8x1xf32, #tpu.memory_space<vmem>>, vector<1x8x1xf32>
    %16 = vector.shape_cast %15 : vector<1x8x1xf32> to vector<8x1xf32>
    %17 = arith.mulf %6, %6 : vector<8x256xf32>
    %cst_15 = arith.constant dense<0.000000e+00> : vector<8xf32>
    %18 = vector.multi_reduction <add>, %17, %cst_15 [1] : vector<8x256xf32> to vector<8xf32>
    %19 = vector.shape_cast %18 : vector<8xf32> to vector<8x1xf32>
    %20 = arith.addf %16, %19 : vector<8x1xf32>
    %c0_16 = arith.constant 0 : index
    %c0_17 = arith.constant 0 : index
    %c0_18 = arith.constant 0 : index
    %21 = vector.load %arg5[%c0_16, %c0_17, %c0_18] : memref<1x8x1xf32, #tpu.memory_space<vmem>>, vector<1x8x1xf32>
    %22 = vector.shape_cast %21 : vector<1x8x1xf32> to vector<8x1xf32>
    %23 = vector.shape_cast %20 : vector<8x1xf32> to vector<1x8x1xf32>
    tpu.vector_store %arg5[%c0_16, %c0_17, %c0_18], %23 {strides = array<i32>} : memref<1x8x1xf32, #tpu.memory_space<vmem>>, vector<1x8x1xf32>,
    return
  }
  func.func @transform_0(%arg0: i32, %arg1: i32) -> (i32, i32, i32) {
    %c0_i32 = arith.constant 0 : i32
    %c0_i32_0 = arith.constant 0 : i32
    return %arg0, %c0_i32, %arg1 : i32, i32, i32
  }
  func.func @transform_1(%arg0: i32, %arg1: i32) -> (i32, i32) {
    %c0_i32 = arith.constant 0 : i32
    %c0_i32_0 = arith.constant 0 : i32
    %c0_i32_1 = arith.constant 0 : i32
    return %c0_i32, %c0_i32_0 : i32, i32
  }
  func.func @transform_2(%arg0: i32, %arg1: i32) -> (i32, i32, i32) {
    %c0_i32 = arith.constant 0 : i32
    %c0_i32_0 = arith.constant 0 : i32
    %c0_i32_1 = arith.constant 0 : i32
    return %arg0, %c0_i32, %c0_i32_0 : i32, i32, i32
  }
  func.func @transform_3(%arg0: i32, %arg1: i32) -> (i32, i32, i32) {
    %c0_i32 = arith.constant 0 : i32
    %c0_i32_0 = arith.constant 0 : i32
    %c0_i32_1 = arith.constant 0 : i32
    return %arg0, %c0_i32, %c0_i32_0 : i32, i32, i32
  }
}

</mosaic_0001>

<bundles_post_ra>
// kernel: tpu_custom_call.1
= control target key start
LH: loop header
LB: loop body
LE: loop exit
PB: predicated region body
PF: predicated region fallthrough
CT: control target
= control target key end

     0   :  { %9 = vsyncpa [#allocation3], 0  ;;  %s746_s0 = inlined_call_operand.hbm [shape: f32[2,4,256], index: 0, kind: input, shape index: {}]   ;;  %s747_s1 = inlined_call_operand.vmem [shape: f32[8,4], index: 1, kind: input, shape index: {}]   ;;  %s748_s2 = inlined_call_operand.vmem [shape: f32[2,4,1], index: 2, kind: output, shape index: {0}]   ;;  %s749_s3 = inlined_call_operand.vmem [shape: f32[2,8,1], index: 3, kind: output, shape index: {1}]  }
   0x1   :  { %11 = vsyncpa [#allocation3 + $0x1], 0  ;;  %s611_s12 = smov 0   ;;  %s613_s13 = smov 0  }
   0x2   :  { %s615_s14 = smov 0   ;;  %s617_s15 = smov 0  }
   0x3   :  { %s619_s16 = smov 0   ;;  %s621_s17 = smov 0  }
   0x4 LB: > { %s433_s18 = sadd.s32 4294967295, %s587_s17   ;;  %s29_s19 = sadd.s32 1, %s583_s16  ;;  %s587_s17 = sphi %s621_s17, %s17_s17   ;;  %s583_s16 = sphi %s619_s16, %s759_s16   ;;  %s579_s15 = sphi %s617_s15, %s758_s15   ;;  %s575_s14 = sphi %s615_s14, %s757_s14   ;;  %s571_s13 = sphi %s613_s13, %s756_s13   ;;  %s567_s12 = sphi %s611_s12, %s755_s12  }
   0x5   : > { %p31_p0 = scmp.ge.s32.totalorder %s29_s19, 2  ;;  %s38_s20 = sadd.s32 1, %s575_s14 }
   0x6   : > { %p45_p1 = scmp.ne.s32.totalorder %s575_s14, %s571_s13  ;;  %p46_p2 = scmp.eq.s32.totalorder %s587_s17, 0 }
   0x7   : > { %s761_s19 = smov (%p31_p0, %s29_s19), 0  ;;  %p51_p4 = scmp.ne.s32.totalorder %s571_s13, %s567_s12 }
   0x8   : > { %p647_p3 = por %p46_p2, %p45_p1  ;;  %s33_s22 = ssub.s32 %s583_s16, %s761_s19 }
   0x9   : > { %p52_p5 = scmp.eq.s32.totalorder %s433_s18, 0  ;;  %p36_p6 = scmp.eq.s32.totalorder %s33_s22, 0 }
   0xa   : > { %p456_p8 = scmp.lt.s32.totalorder %s587_s17, 2  ;;  %s151_s25 = sand.u32 1, %s575_s14  }
   0xb   : > { %p654_p7 = por %p52_p5, %p51_p4  ;;  %s449_s26 = sshll.u32 %s583_s16, 7 }
   0xc   : > { %s660_s24 = scalar_select %p36_p6, %s575_s14, %s38_s20  }
   0xd   : > { %s437_s27 = sshll.u32 %s151_s25, 3  ;;  %s667_s30 = scalar_lea.hbm %s746_s0, %s449_s26 }
   0xe   : > { %s155_s4 = scalar_lea.vmem [#allocation2], %s437_s27  ;;  %p671_p9 = pnand %p456_p8, %p647_p3 }
   0xf   : > { %s165_s5 = sshll.u32 %s155_s4, 4  ;;  %s152_s7 = scalar_lea.sflag [#allocation3], %s151_s25  ;;  %s675_s5 = int_to_ptr.vmem [resolvable:$true] %s165_s5 }
  0x10   : > { %s507_s8 = scalar_lea.hbm %s667_s30, 128  ;;  %p509_p13 = pneg %p671_p9 }
  0x11   : > { %p508_p12 = scmp.ne.s32.totalorder %s667_s30, %s507_s8  ;;  %s512_s11 = scalar_lea.hbm %s746_s0, 256 }
  0x12   : > { %p513_p2 = scmp.lt.u32.totalorder %s667_s30, %s746_s0  ;;  %p514_p3 = scmp.lt.u32.totalorder %s512_s11, %s507_s8 }
  0x13   : > { %p510_p0 = pnand %p509_p13, %p508_p12  ;;  %p516_p5 = scmp.lt.u32.totalorder %s507_s8, %s667_s30 }
  0x14   : > { %p515_p4 = por %p514_p3, %p513_p2 }
  0x15   : > { %p511_p1 = pneg %p510_p0 }
  0x16   : > { %p517_p6 = por %p516_p5, %p515_p4 }
  0x18   : > { %p518_p8 = pnand %p517_p6, %p511_p1 }
  0x1a   : > { %521 = shalt.err (!%p518_p8)
}
  0x1b   : > { %s522_s20 = scalar_lea.vmem %s675_s5, 128  ;;  %s589_s21 = smov [#allocation2]  }
  0x1c   : > { %p523_p12 = scmp.ne.s32.totalorder %s675_s5, %s522_s20  ;;  %s527_s22 = sshll.u32 %s589_s21, 4  ;;  %s528_s22 = int_to_ptr.vmem [resolvable:$false] %s527_s22 }
  0x1d   : > { %s529_s25 = scalar_lea.vmem %s528_s22, 256  ;;  %p530_p11 = scmp.lt.s32.totalorder %s675_s5, %s528_s22 }
  0x1e   : > { %p525_p0 = pnand %p523_p12, %p509_p13  ;;  %p531_p2 = scmp.lt.s32.totalorder %s529_s25, %s522_s20 }
  0x20   : > { %p526_p10 = pneg %p525_p0  ;;  %p532_p3 = por %p531_p2, %p530_p11 }
  0x22   : > { %p533_p4 = pnand %p532_p3, %p526_p10 }
  0x24   : > { %536 = shalt.err (!%p533_p4)
}
  0x25   : > { %455 = dma.hbm_to_vmem [thread:$0]  (!%p671_p9), %s667_s30, 128, %s675_s5, %s152_s7  }
  0x26   : > { %p753_p1 = scmp.lt.s32.totalorder %s587_s17, 3  ;;  %p754_p5 = scmp.ge.s32.totalorder %s587_s17, 1 }
  0x28   : > { %p171_p13 = pnand %p754_p5, %p753_p1 }
  0x29   : > { %s176_s26 = sand.u32 (!%p171_p13), 1, %s571_s13  }
  0x2a   : > { %174 = sbr.rel (%p171_p13) target bundleno = 417 (0x1a1), region = 28  ;;  %s441_s27 = sshll.u32 (!%p171_p13), %s176_s26, 3 }
  0x2b   : > { %s177_s28 = scalar_lea.sflag (!%p171_p13), [#allocation3], %s176_s26  ;;  %s180_s29 = scalar_lea.vmem (!%p171_p13), [#allocation2], %s441_s27 }
  0x31   : > { %562 = dma.done.wait (%p654_p7), %s177_s28, 128  }
  0x32   : > { %564 = vsyncadd (%p654_p7), %s177_s28, 4294967168  ;;  %v590_v0 = vmov 0.0   ;;  %v223_v1 = vld [vmem:[%s180_s29] sm:$0xff]  ;;  %vm231_vm0 = vcmask 1043456   ;;  %vm227_vm1 = vcmask 31744   ;;  %p207_p7 = scmp.lt.s32.totalorder %s579_s15, 1 }
  0x33   : > { %300 = vmatprep.mubr.f32.mxu0 %v590_v0  ;;  %v226_v2 = vcombine.high %v223_v1, %v223_v1  ;;  %v224_v3 = vld [vmem:[%s747_s1] sm:$0xff]  ;;  %v309_v4 = vsel %vm231_vm0, %v223_v1, 0.0  ;;  %vm219_vm2 = vcmask 3072   ;;  %vm221_vm3 = vcmask 7168  }
  0x34   : > { %s763_s15 = smov (!%p207_p7, %s579_s15), 1 }
  0x35   : > { %444 = vmatprep.subr.msk.mxu0 %vm231_vm0, %v226_v2  ;;  %v310_v5 = vsel %vm231_vm0, %v226_v2, 0.0  ;;  %s442_s23 = sshll.u32 %s763_s15, 2  ;;  %s443_s8 = sshll.u32 %s763_s15, 3 }
  0x36   : > { %445 = vmatpush1.msk.msra.mxu0 %vm231_vm0, %v223_v1  ;;  %v311_v6 = vadd.f32 %v310_v5, %v309_v4  ;;  %s210_s7 = scalar_lea.vmem %s748_s2, %s442_s23  ;;  %s214_s11 = scalar_lea.vmem %s749_s3, %s443_s8 }
  0x37   : > { %446 = vmatmul.mubr.msk.f32.vlgmr.msra.gmra.mrb[0].mxu0 %vm227_vm1, %v224_v3  ;;  %220 = vst.msk [vmem:[%s210_s7] sm:$0xf] %vm219_vm2, %v590_v0 }
  0x38   : > { %312 = vadd.xlane.f32.xlu0 %v311_v6  ;;  %222 = vst.msk [vmem:[%s214_s11] sm:$0xff] %vm221_vm3, %v590_v0 }
  0x3e   : > { %v307_v12 = vld [vmem:[%s210_s7] sm:$0xf] }
  0x3f   : > { %v317_v15 = vld [vmem:[%s214_s11] sm:$0xff] }
  0xc5   : > { %v313_v13 = vpop.xlane.xlu0 %312 }
  0xc6   : > { %v314_v14 = vadd.f32 %v313_v13, %v307_v12 }
  0xc8   : > { %316 = vst.msk [vmem:[%s210_s7] sm:$0xf] %vm219_vm2, %v314_v14 }
 0x10a   : > { %v302_v7 = vpop.f32.mrb[0].mxu0 }
 0x10b   : > { %v318_v8 = vmul.f32 %v302_v7, %v302_v7  ;;  %v304_v9 = vpop.f32.mrb[1].mxu0 }
 0x10c   : > { %v319_v10 = vmul.f32 %v304_v9, %v304_v9 }
 0x10e   : > { %v320_v11 = vadd.f32 %v319_v10, %v318_v8 }
 0x110   : > { %321 = vadd.xlane.f32.xlu0 %v320_v11 }
 0x19d   : > { %v322_v16 = vpop.xlane.xlu0 %321 }
 0x19e   : > { %v323_v17 = vadd.f32 %v322_v16, %v317_v15 }
 0x1a0   : > { %325 = vst.msk [vmem:[%s214_s11] sm:$0xff] %vm221_vm3, %v323_v17 }
 0x1a1 PF: > { %s17_s17 = sadd.s32 1, %s587_s17   ;;  %s755_s12 = smov %s571_s13 }
 0x1a2   : > { %p14_p9 = scmp.ge.s32.totalorder %s17_s17, 4   ;;  %s756_s13 = smov %s575_s14 }
 0x1a3   : > { %s757_s14 = smov %s660_s24  ;;  %s758_s15 = smov %s583_s16 }
 0x1a4   : > { %s759_s16 = smov %s761_s19  ;;  %16 = sbr.rel (!%p14_p9) target bundleno = 4 (0x4), region = 84 }
 0x1ab   :  { %359 = vsyncpa [#allocation3], 1 }
 0x1ac   :  { %361 = vsyncpa [#allocation3 + $0x1], 1 }

</bundles_post_ra>
